<compile_context>
chip_gen: v6e
topology: v6e:2x2x1
jax: 0.10.0
libtpu: 0.0.40
codegen_flags: <defaults>
</compile_context>

<pallas_src>
import jax
import jax.numpy as jnp
from jax.experimental import pallas as pl
from jax.experimental.pallas import tpu as pltpu

NKNOTS = 11            # nknots=10 is even -> bumped to 11 in __init__
NBINS = NKNOTS // 2    # 5
EPS = 1e-5
_TAIL_BOUND = 3.3
# bins = linspace(0, 3.3, 5); compile-time immediates (no SMEM input needed).
_BINS = tuple(_TAIL_BOUND * i / (NBINS - 1) for i in range(NBINS))


# --------------------------------------------------------------------------- #
# Shared spline math
# --------------------------------------------------------------------------- #
def _splash_spline(xn, cdf):
    """Monotonic SPLASH spline on normalized input.

    out = sum_i where(xn>=0, cdf[i], -cdf[NKNOTS-1-i]) * max(|xn| - bins[i], 0)
    which equals the two-ReLU torch form because bins[i] >= 0 and bins[0] == 0.
    `cdf` is a list of NKNOTS scalar (rank-0) values.
    """
    pos = xn >= 0.0
    a = jnp.abs(xn)
    out = jnp.where(pos, cdf[0], -cdf[NKNOTS - 1]) * a      # bins[0] == 0
    for i in range(1, NBINS):
        coeff = jnp.where(pos, cdf[i], -cdf[NKNOTS - 1 - i])
        out = out + coeff * jnp.maximum(a - _BINS[i], 0.0)
    return out


# --------------------------------------------------------------------------- #
# Fused kernel: BatchNorm stats + spline in one pallas_call (grid over C only)
# --------------------------------------------------------------------------- #
def _make_fused_kernel(N, chunk):
    n_full = N // chunk
    rem = N - n_full * chunk

    def kernel(cdf_ref, gb_ref, x_ref, o_ref):
        tile_c = x_ref.shape[1]
        cdf = [cdf_ref[i] for i in range(NKNOTS)]            # scalar SMEM loads, hoisted

        # ---- pass 1: per-channel sum / sum-of-squares, batch-chunked ------- #
        def stats_body(i, carry):
            s, ss = carry
            r = pl.multiple_of(i * chunk, 8)
            xc = x_ref[pl.ds(r, chunk), :].astype(jnp.float32)
            return (s + jnp.sum(xc, axis=0, keepdims=True),
                    ss + jnp.sum(xc * xc, axis=0, keepdims=True))

        zero = jnp.zeros((1, tile_c), jnp.float32)
        s, ss = jax.lax.fori_loop(0, n_full, stats_body, (zero, zero))
        if rem:
            xt = x_ref[pl.ds(n_full * chunk, rem), :].astype(jnp.float32)
            s = s + jnp.sum(xt, axis=0, keepdims=True)
            ss = ss + jnp.sum(xt * xt, axis=0, keepdims=True)

        inv_n = 1.0 / N
        mean = s * inv_n
        # Clamp: single-pass E[x^2]-mean^2 can cancel slightly negative in f32.
        var = jnp.maximum(ss * inv_n - mean * mean, 0.0)
        gamma = gb_ref[0:1, :]
        beta = gb_ref[1:2, :]
        scale = gamma * jax.lax.rsqrt(var + EPS)              # per-channel rows only
        shift = beta - mean * scale

        # ---- pass 2: normalize + spline, chunk-wise stores ----------------- #
        def apply_rows(r, nrows):
            xc = x_ref[pl.ds(r, nrows), :].astype(jnp.float32)
            xn = xc * scale + shift
            o_ref[pl.ds(r, nrows), :] = _splash_spline(xn, cdf).astype(o_ref.dtype)

        @pl.loop(0, n_full)
        def _(i):
            apply_rows(pl.multiple_of(i * chunk, 8), chunk)

        if rem:
            apply_rows(n_full * chunk, rem)

    return kernel


# --------------------------------------------------------------------------- #
# Split-path kernel: pure elementwise (scale/shift precomputed in XLA)
# --------------------------------------------------------------------------- #
def _elementwise_kernel(cdf_ref, ss_ref, x_ref, o_ref):
    cdf = [cdf_ref[i] for i in range(NKNOTS)]
    xn = x_ref[...].astype(jnp.float32) * ss_ref[0:1, :] + ss_ref[1:2, :]
    o_ref[...] = _splash_spline(xn, cdf).astype(o_ref.dtype)


# --------------------------------------------------------------------------- #
# VMEM budgeting & tile selection
# --------------------------------------------------------------------------- #
def _vmem_capacity_bytes():
    try:
        return int(pltpu.get_tpu_info().vmem_capacity_bytes)
    except Exception:
        return 64 << 20          # conservative fallback (v7x per-TensorCore VMEM)


def _fused_vmem_bytes(N, tile_c, chunk):
    blk = N * tile_c * 4
    io = 2 * 2 * blk                      # x + out blocks, double-buffered
    temps = 6 * chunk * tile_c * 4        # xn / |xn| / mask / spline partials per chunk
    rows = 12 * tile_c * 4                # sum/sumsq/mean/var/scale/shift/gamma/beta rows
    return io + temps + rows


def _split_vmem_bytes(tile_n, tile_c):
    blk = tile_n * tile_c * 4
    return 2 * 2 * blk + 6 * blk + 8 * tile_c * 4


def _pick_tile_c_fused(N, C, chunk, budget):
    cands = [k * 128 for k in range(1, C // 128 + 1)
             if C % (k * 128) == 0 and k * 128 <= 1024]
    fitting = [tc for tc in cands if _fused_vmem_bytes(N, tc, chunk) <= budget]
    if not fitting:
        return None                        # fused block cannot fit -> split path
    # Prefer lane-dense tiles (>=512) with >=8 grid steps (pipelining + balance
    # across v7x's 2 TensorCores); otherwise keep >=2 steps when C allows.
    dense_many = [tc for tc in fitting if tc >= 512 and C // tc >= 8]
    if dense_many:
        return min(dense_many)
    multi = [tc for tc in fitting if C // tc >= 2]
    if multi:
        return max(multi)
    return max(fitting)


def _pick_tiles_split(N, C, budget):
    c_cands = [k * 128 for k in range(1, C // 128 + 1)
               if C % (k * 128) == 0 and k * 128 <= 1024]
    n_cands = [d for d in range(8, min(N, 512) + 1, 8) if N % d == 0] or [N]
    best = (n_cands[0], 128)
    for tc in c_cands:
        for tn in n_cands:
            if _split_vmem_bytes(tn, tc) <= budget and tn * tc > best[0] * best[1]:
                best = (tn, tc)
    return best


# --------------------------------------------------------------------------- #
# Wrappers
# --------------------------------------------------------------------------- #
def _call_fused(x, cdf, gamma, beta, *, tile_c, chunk, vmem_cap):
    N, C = x.shape
    gb = jnp.stack([gamma.astype(jnp.float32), beta.astype(jnp.float32)], axis=0)  # (2, C)
    need = _fused_vmem_bytes(N, tile_c, chunk)
    vmem_limit = int(min(max(need + (8 << 20), 16 << 20), int(vmem_cap * 0.75)))
    cost = pl.CostEstimate(flops=int(30 * N * C), transcendentals=int(C),
                           bytes_accessed=int(8 * N * C))
    return pl.pallas_call(
        _make_fused_kernel(N, chunk),
        out_shape=jax.ShapeDtypeStruct((N, C), x.dtype),
        grid_spec=pltpu.PrefetchScalarGridSpec(
            num_scalar_prefetch=0,
            grid=(C // tile_c,),
            in_specs=[
                pl.BlockSpec(memory_space=pltpu.SMEM),            # cdf  (NKNOTS,)
                pl.BlockSpec((2, tile_c), lambda j: (0, j)),      # gamma/beta packed
                pl.BlockSpec((N, tile_c), lambda j: (0, j)),      # x
            ],
            out_specs=pl.BlockSpec((N, tile_c), lambda j: (0, j)),
        ),
        compiler_params=pltpu.CompilerParams(
            dimension_semantics=("parallel",),
            vmem_limit_bytes=vmem_limit,
        ),
        cost_estimate=cost,
    )(cdf, gb, x)


def _call_split(x, cdf, gamma, beta, *, budget, vmem_cap):
    N, C = x.shape
    x32 = x.astype(jnp.float32)
    # BatchNorm stats hoisted to a cheap XLA reduction (two-pass, biased var).
    mean = jnp.mean(x32, axis=0)
    var = jnp.mean(jnp.square(x32 - mean[None, :]), axis=0)
    scale = gamma.astype(jnp.float32) * jax.lax.rsqrt(var + EPS)
    shift = beta.astype(jnp.float32) - mean * scale
    ss = jnp.stack([scale, shift], axis=0)                     # (2, C)

    tile_n, tile_c = _pick_tiles_split(N, C, budget)
    need = _split_vmem_bytes(tile_n, tile_c)
    vmem_limit = int(min(max(need + (8 << 20), 16 << 20), int(vmem_cap * 0.75)))
    cost = pl.CostEstimate(flops=int(27 * N * C), transcendentals=0,
                           bytes_accessed=int(8 * N * C))
    return pl.pallas_call(
        _elementwise_kernel,
        out_shape=jax.ShapeDtypeStruct((N, C), x.dtype),
        grid_spec=pltpu.PrefetchScalarGridSpec(
            num_scalar_prefetch=0,
            grid=(N // tile_n, C // tile_c),
            in_specs=[
                pl.BlockSpec(memory_space=pltpu.SMEM),                 # cdf
                pl.BlockSpec((2, tile_c), lambda i, j: (0, j)),        # scale/shift
                pl.BlockSpec((tile_n, tile_c), lambda i, j: (i, j)),   # x
            ],
            out_specs=pl.BlockSpec((tile_n, tile_c), lambda i, j: (i, j)),
        ),
        compiler_params=pltpu.CompilerParams(
            dimension_semantics=("parallel", "parallel"),
            vmem_limit_bytes=vmem_limit,
        ),
        cost_estimate=cost,
    )(cdf, ss, x)


def monotonic_splash(x, pdf, gamma, beta, *, mode="auto", tile_c=None, chunk_rows=512):
    """MonotonicSPLASH forward (training-mode BatchNorm1d + monotonic spline).

    x: (N, C) float. pdf: (NKNOTS,). gamma/beta: (C,) BatchNorm affine params.
    mode: "auto" | "fused" | "split".  "auto" uses the fused single-read kernel
    whenever its (N, tile_c) block fits the generation-aware VMEM budget and
    falls back to the split (stats-hoisted, N×C tiled) kernel otherwise — the
    split mode can also be forced explicitly (recommended on v7x for large N).
    """
    N, C = x.shape
    assert C % 128 == 0, "channel dim must be a multiple of 128"
    # TODO(synk): pad / mask a lane tail to support arbitrary C like nn.BatchNorm1d.
    cdf = jax.nn.softmax(pdf.astype(jnp.float32), axis=-1)    # tiny; computed in glue

    vmem_cap = _vmem_capacity_bytes()
    budget = int(vmem_cap * 0.45)       # ~29 MiB on v7x (64 MiB), ~58 MiB on v5e/v6e
    chunk = max(1, min(chunk_rows, N))

    if mode == "auto":
        tc = tile_c if tile_c is not None else _pick_tile_c_fused(N, C, chunk, budget)
        if tc is not None:
            mode, tile_c = "fused", tc
        else:
            mode = "split"

    if mode == "fused":
        if tile_c is None:
            tile_c = _pick_tile_c_fused(N, C, chunk, budget)
            if tile_c is None:
                raise ValueError(
                    f"fused MonotonicSPLASH block (N={N}, tile_c=128) exceeds the "
                    f"VMEM budget ({budget >> 20} MiB); use mode='split'.")
        assert C % tile_c == 0 and tile_c % 128 == 0
        return _call_fused(x, cdf, gamma, beta, tile_c=tile_c, chunk=chunk,
                           vmem_cap=vmem_cap)
    elif mode == "split":
        return _call_split(x, cdf, gamma, beta, budget=budget, vmem_cap=vmem_cap)
    else:
        raise ValueError(f"unknown mode: {mode!r}")


# --------------------------------------------------------------------------- #
# Reference & test
# --------------------------------------------------------------------------- #
def monotonic_splash_reference(x, pdf, gamma, beta):
    """Pure-JAX reference mirroring the PyTorch forward (two-pass BN stats)."""
    mean = jnp.mean(x, axis=0, keepdims=True)
    var = jnp.mean((x - mean) ** 2, axis=0, keepdims=True)
    xn = (x - mean) / jnp.sqrt(var + EPS) * gamma + beta
    bins = jnp.linspace(0.0, _TAIL_BOUND, NBINS)
    cdf = jax.nn.softmax(pdf, axis=-1)
    out = jnp.zeros_like(xn)
    for i in range(NBINS):
        out = out + cdf[i] * jax.nn.relu(xn - bins[i]) \
                  - cdf[NKNOTS - 1 - i] * jax.nn.relu(-xn - bins[i])
    return out


if __name__ == "__main__":
    # Small deterministic test (batch=8, features=256 -> multi-step channel grid
    # for the fused path).  Both the fused and the split paths are exercised.
    N, C = 8, 256
    key = jax.random.PRNGKey(0)
    kx, kp, kg, kb = jax.random.split(key, 4)

    x = jax.random.normal(kx, (N, C), dtype=jnp.float32)
    # pdf ~ U(-0.1, 0.1) as in __init__(init='random')
    pdf = jax.random.uniform(kp, (NKNOTS,), minval=-0.1, maxval=0.1, dtype=jnp.float32)
    # BatchNorm affine params (perturbed from 1/0 init to exercise the fold)
    gamma = 1.0 + 0.1 * jax.random.normal(kg, (C,), dtype=jnp.float32)
    beta = 0.1 * jax.random.normal(kb, (C,), dtype=jnp.float32)

    ref = monotonic_splash_reference(x, pdf, gamma, beta)

    for mode in ("auto", "fused", "split"):
        out = jax.block_until_ready(monotonic_splash(x, pdf, gamma, beta, mode=mode))
        assert out.shape == x.shape and out.dtype == x.dtype
        assert jnp.allclose(out, ref, atol=2e-5, rtol=1e-4), f"mismatch vs reference ({mode})"

    print("KERNEL_OK")
</pallas_src>

<mosaic_0001>
module attributes {stable_mosaic.version = 11 : i64} {
  func.func @kernel(%arg0: i32, %arg1: memref<11xf32, #tpu.memory_space<smem>>, %arg2: memref<2x128xf32, #tpu.memory_space<vmem>>, %arg3: memref<8x128xf32, #tpu.memory_space<vmem>>, %arg4: memref<8x128xf32, #tpu.memory_space<vmem>>) attributes {dimension_semantics = [#tpu.dimension_semantics<parallel>], iteration_bounds = array<i64: 2>, scalar_prefetch = 0 : i64, scratch_operands = 0 : i64, tpu.core_type = #tpu.core_type<tc>, window_params = [{transform_indices = @transform_0, window_bounds = array<i64: 11>}, {transform_indices = @transform_1, window_bounds = array<i64: 2, 128>}, {transform_indices = @transform_2, window_bounds = array<i64: 8, 128>}, {transform_indices = @transform_3, window_bounds = array<i64: 8, 128>}]} {
    %c0 = arith.constant 0 : index
    %0 = memref.load %arg1[%c0] : memref<11xf32, #tpu.memory_space<smem>>
    %c1 = arith.constant 1 : index
    %1 = memref.load %arg1[%c1] : memref<11xf32, #tpu.memory_space<smem>>
    %c2 = arith.constant 2 : index
    %2 = memref.load %arg1[%c2] : memref<11xf32, #tpu.memory_space<smem>>
    %c3 = arith.constant 3 : index
    %3 = memref.load %arg1[%c3] : memref<11xf32, #tpu.memory_space<smem>>
    %c4 = arith.constant 4 : index
    %4 = memref.load %arg1[%c4] : memref<11xf32, #tpu.memory_space<smem>>
    %c6 = arith.constant 6 : index
    %5 = memref.load %arg1[%c6] : memref<11xf32, #tpu.memory_space<smem>>
    %c7 = arith.constant 7 : index
    %6 = memref.load %arg1[%c7] : memref<11xf32, #tpu.memory_space<smem>>
    %c8 = arith.constant 8 : index
    %7 = memref.load %arg1[%c8] : memref<11xf32, #tpu.memory_space<smem>>
    %c9 = arith.constant 9 : index
    %8 = memref.load %arg1[%c9] : memref<11xf32, #tpu.memory_space<smem>>
    %c10 = arith.constant 10 : index
    %9 = memref.load %arg1[%c10] : memref<11xf32, #tpu.memory_space<smem>>
    %cst = arith.constant 0.000000e+00 : f32
    %10 = vector.broadcast %cst : f32 to vector<1x128xf32>
    %c0_i32 = arith.constant 0 : i32
    %c8_i32 = arith.constant 8 : i32
    %11 = arith.muli %c0_i32, %c8_i32 : i32
    %12 = tpu.assume_multiple %11, 8 : i32
    %13 = arith.index_cast %12 : i32 to index
    %c0_0 = arith.constant 0 : index
    %14 = vector.load %arg3[%13, %c0_0] : memref<8x128xf32, #tpu.memory_space<vmem>>, vector<8x128xf32>
    %cst_1 = arith.constant dense<0.000000e+00> : vector<128xf32>
    %15 = vector.multi_reduction <add>, %14, %cst_1 [0] : vector<8x128xf32> to vector<128xf32>
    %16 = vector.shape_cast %15 : vector<128xf32> to vector<1x128xf32>
    %17 = arith.addf %10, %16 : vector<1x128xf32>
    %18 = arith.mulf %14, %14 : vector<8x128xf32>
    %cst_2 = arith.constant dense<0.000000e+00> : vector<128xf32>
    %19 = vector.multi_reduction <add>, %18, %cst_2 [0] : vector<8x128xf32> to vector<128xf32>
    %20 = vector.shape_cast %19 : vector<128xf32> to vector<1x128xf32>
    %21 = arith.addf %10, %20 : vector<1x128xf32>
    %c1_i32 = arith.constant 1 : i32
    %cst_3 = arith.constant 1.250000e-01 : f32
    %22 = vector.broadcast %cst_3 : f32 to vector<1x128xf32>
    %23 = arith.mulf %17, %22 : vector<1x128xf32>
    %cst_4 = arith.constant 1.250000e-01 : f32
    %24 = vector.broadcast %cst_4 : f32 to vector<1x128xf32>
    %25 = arith.mulf %21, %24 : vector<1x128xf32>
    %26 = arith.mulf %23, %23 : vector<1x128xf32>
    %27 = arith.subf %25, %26 : vector<1x128xf32>
    %cst_5 = arith.constant 0.000000e+00 : f32
    %28 = vector.broadcast %cst_5 : f32 to vector<1x128xf32>
    %29 = arith.maximumf %27, %28 : vector<1x128xf32>
    %c0_6 = arith.constant 0 : index
    %c0_7 = arith.constant 0 : index
    %30 = vector.load %arg2[%c0_6, %c0_7] : memref<2x128xf32, #tpu.memory_space<vmem>>, vector<1x128xf32>
    %c1_8 = arith.constant 1 : index
    %c0_9 = arith.constant 0 : index
    %31 = vector.load %arg2[%c1_8, %c0_9] : memref<2x128xf32, #tpu.memory_space<vmem>>, vector<1x128xf32>
    %cst_10 = arith.constant 9.99999974E-6 : f32
    %32 = vector.broadcast %cst_10 : f32 to vector<1x128xf32>
    %33 = arith.addf %29, %32 : vector<1x128xf32>
    %34 = math.rsqrt %33 : vector<1x128xf32>
    %35 = arith.mulf %30, %34 : vector<1x128xf32>
    %36 = arith.mulf %23, %35 : vector<1x128xf32>
    %37 = arith.subf %31, %36 : vector<1x128xf32>
    %c0_i32_11 = arith.constant 0 : i32
    %c1_i32_12 = arith.constant 1 : i32
    %38 = arith.muli %c0_i32_11, %c1_i32_12 : i32
    %c0_i32_13 = arith.constant 0 : i32
    %39 = arith.addi %c0_i32_13, %38 : i32
    %c8_i32_14 = arith.constant 8 : i32
    %40 = arith.muli %39, %c8_i32_14 : i32
    %41 = tpu.assume_multiple %40, 8 : i32
    %42 = arith.index_cast %41 : i32 to index
    %c0_15 = arith.constant 0 : index
    %43 = vector.load %arg3[%42, %c0_15] : memref<8x128xf32, #tpu.memory_space<vmem>>, vector<8x128xf32>
    %44 = vector.broadcast %35 : vector<1x128xf32> to vector<8x128xf32>
    %45 = arith.mulf %43, %44 : vector<8x128xf32>
    %46 = vector.broadcast %37 : vector<1x128xf32> to vector<8x128xf32>
    %47 = arith.addf %45, %46 : vector<8x128xf32>
    %cst_16 = arith.constant 0.000000e+00 : f32
    %48 = vector.broadcast %cst_16 : f32 to vector<8x128xf32>
    %49 = arith.cmpf oge, %47, %48 : vector<8x128xf32>
    %50 = math.absf %47 : vector<8x128xf32>
    %cst_17 = arith.constant 0.000000e+00 : f32
    %51 = arith.subf %cst_17, %9 : f32
    %52 = vector.broadcast %0 : f32 to vector<8x128xf32>
    %53 = vector.broadcast %51 : f32 to vector<8x128xf32>
    %54 = arith.select %49, %52, %53 : vector<8x128xi1>, vector<8x128xf32>
    %55 = arith.mulf %54, %50 : vector<8x128xf32>
    %cst_18 = arith.constant 0.000000e+00 : f32
    %56 = arith.subf %cst_18, %8 : f32
    %57 = vector.broadcast %1 : f32 to vector<8x128xf32>
    %58 = vector.broadcast %56 : f32 to vector<8x128xf32>
    %59 = arith.select %49, %57, %58 : vector<8x128xi1>, vector<8x128xf32>
    %cst_19 = arith.constant 0.824999988 : f32
    %60 = vector.broadcast %cst_19 : f32 to vector<8x128xf32>
    %61 = arith.subf %50, %60 : vector<8x128xf32>
    %cst_20 = arith.constant 0.000000e+00 : f32
    %62 = vector.broadcast %cst_20 : f32 to vector<8x128xf32>
    %63 = arith.maximumf %61, %62 : vector<8x128xf32>
    %64 = arith.mulf %59, %63 : vector<8x128xf32>
    %65 = arith.addf %55, %64 : vector<8x128xf32>
    %cst_21 = arith.constant 0.000000e+00 : f32
    %66 = arith.subf %cst_21, %7 : f32
    %67 = vector.broadcast %2 : f32 to vector<8x128xf32>
    %68 = vector.broadcast %66 : f32 to vector<8x128xf32>
    %69 = arith.select %49, %67, %68 : vector<8x128xi1>, vector<8x128xf32>
    %cst_22 = arith.constant 1.650000e+00 : f32
    %70 = vector.broadcast %cst_22 : f32 to vector<8x128xf32>
    %71 = arith.subf %50, %70 : vector<8x128xf32>
    %cst_23 = arith.constant 0.000000e+00 : f32
    %72 = vector.broadcast %cst_23 : f32 to vector<8x128xf32>
    %73 = arith.maximumf %71, %72 : vector<8x128xf32>
    %74 = arith.mulf %69, %73 : vector<8x128xf32>
    %75 = arith.addf %65, %74 : vector<8x128xf32>
    %cst_24 = arith.constant 0.000000e+00 : f32
    %76 = arith.subf %cst_24, %6 : f32
    %77 = vector.broadcast %3 : f32 to vector<8x128xf32>
    %78 = vector.broadcast %76 : f32 to vector<8x128xf32>
    %79 = arith.select %49, %77, %78 : vector<8x128xi1>, vector<8x128xf32>
    %cst_25 = arith.constant 2.475000e+00 : f32
    %80 = vector.broadcast %cst_25 : f32 to vector<8x128xf32>
    %81 = arith.subf %50, %80 : vector<8x128xf32>
    %cst_26 = arith.constant 0.000000e+00 : f32
    %82 = vector.broadcast %cst_26 : f32 to vector<8x128xf32>
    %83 = arith.maximumf %81, %82 : vector<8x128xf32>
    %84 = arith.mulf %79, %83 : vector<8x128xf32>
    %85 = arith.addf %75, %84 : vector<8x128xf32>
    %cst_27 = arith.constant 0.000000e+00 : f32
    %86 = arith.subf %cst_27, %5 : f32
    %87 = vector.broadcast %4 : f32 to vector<8x128xf32>
    %88 = vector.broadcast %86 : f32 to vector<8x128xf32>
    %89 = arith.select %49, %87, %88 : vector<8x128xi1>, vector<8x128xf32>
    %cst_28 = arith.constant 3.300000e+00 : f32
    %90 = vector.broadcast %cst_28 : f32 to vector<8x128xf32>
    %91 = arith.subf %50, %90 : vector<8x128xf32>
    %cst_29 = arith.constant 0.000000e+00 : f32
    %92 = vector.broadcast %cst_29 : f32 to vector<8x128xf32>
    %93 = arith.maximumf %91, %92 : vector<8x128xf32>
    %94 = arith.mulf %89, %93 : vector<8x128xf32>
    %95 = arith.addf %85, %94 : vector<8x128xf32>
    %96 = arith.index_cast %41 : i32 to index
    %c0_30 = arith.constant 0 : index
    %97 = vector.load %arg4[%96, %c0_30] : memref<8x128xf32, #tpu.memory_space<vmem>>, vector<8x128xf32>
    tpu.vector_store %arg4[%96, %c0_30], %95 {strides = array<i32>} : memref<8x128xf32, #tpu.memory_space<vmem>>, vector<8x128xf32>,
    %c1_i32_31 = arith.constant 1 : i32
    return
  }
  func.func @transform_0(%arg0: i32) -> i32 {
    %c0_i32 = arith.constant 0 : i32
    %c0_i32_0 = arith.constant 0 : i32
    return %c0_i32 : i32
  }
  func.func @transform_1(%arg0: i32) -> (i32, i32) {
    %c0_i32 = arith.constant 0 : i32
    %c0_i32_0 = arith.constant 0 : i32
    return %c0_i32, %arg0 : i32, i32
  }
  func.func @transform_2(%arg0: i32) -> (i32, i32) {
    %c0_i32 = arith.constant 0 : i32
    %c0_i32_0 = arith.constant 0 : i32
    return %c0_i32, %arg0 : i32, i32
  }
  func.func @transform_3(%arg0: i32) -> (i32, i32) {
    %c0_i32 = arith.constant 0 : i32
    %c0_i32_0 = arith.constant 0 : i32
    return %c0_i32, %arg0 : i32, i32
  }
}

</mosaic_0001>

<bundles_post_ra>
// kernel: tpu_custom_call.1
= control target key start
LH: loop header
LB: loop body
LE: loop exit
PB: predicated region body
PF: predicated region fallthrough
CT: control target
= control target key end

     0   :  { %8 = vsyncpa [#allocation5], 0  ;;  %s938_s0 = inlined_call_operand.hbm [shape: f32[11], index: 0, kind: input, shape index: {}]   ;;  %s939_s1 = inlined_call_operand.hbm [shape: f32[2,256], index: 1, kind: input, shape index: {}]   ;;  %s940_s2 = inlined_call_operand.hbm [shape: f32[8,256], index: 2, kind: input, shape index: {}]   ;;  %s941_s3 = inlined_call_operand.hbm [shape: f32[8,256], index: 3, kind: output, shape index: {}]  }
   0x1   :  { %9 = vsyncpa [#allocation3], 0 }
   0x2   :  { %11 = vsyncpa [#allocation3 + $0x1], 0 }
   0x3   :  { %12 = vsyncpa [#allocation8], 0 }
   0x4   :  { %14 = vsyncpa [#allocation8 + $0x1], 0 }
   0x5   :  { %15 = vsyncpa [#allocation4], 0 }
   0x6   :  { %17 = vsyncpa [#allocation4 + $0x1], 0  ;;  %s701_s12 = smov 0   ;;  %s703_s13 = smov 0  }
   0x7   :  { %s705_s14 = smov 0   ;;  %s707_s15 = smov 0  }
   0x8 LB: > { %s722_s16 = sadd.s32 4294967295, %s675_s15   ;;  %s442_s17 = sadd.s32 4294967294, %s675_s15   ;;  %s675_s15 = sphi %s707_s15, %s961_s15   ;;  %s671_s14 = sphi %s705_s14, %s960_s14   ;;  %s667_s13 = sphi %s703_s13, %s959_s13   ;;  %s663_s12 = sphi %s701_s12, %s958_s12  }
   0x9   : > { %s726_s18 = sadd.s32 1, %s675_s15   ;;  %s51_s19 = sadd.s32 1, %s671_s14 }
   0xa   : > { %s48_s20 = ssub.s32 %s675_s15, %s726_s18  ;;  %p58_p0 = scmp.ne.s32.totalorder %s671_s14, %s667_s13 }
   0xb   : > { %p49_p1 = scmp.eq.s32.totalorder %s48_s20, 0  ;;  %p64_p2 = scmp.ne.s32.totalorder %s667_s13, %s663_s12 }
   0xc   : > { %p942_p3 = scmp.eq.s32.totalorder %s722_s16, 0  ;;  %p114_p4 = scmp.eq.s32.totalorder %s722_s16, 1 }
   0xd   : > { %s738_s21 = scalar_select %p49_p1, %s671_s14, %s51_s19  }
   0xe   : > { %p742_p5 = por %p942_p3, %p64_p2  ;;  %p749_p6 = por %p114_p4, %p58_p0 }
   0xf   : > { %p120_p7 = scmp.eq.s32.totalorder %s442_s17, 1  ;;  %p443_p8 = scmp.ge.s32.totalorder %s675_s15, 1 }
  0x10   : > { %s946_s22 = scalar_select %p742_p5, 1, 0 }
  0x11   : > { %s947_s23 = scalar_select %p749_p6, 1, 0 }
  0x12   : > { %p127_p9 = scmp.lt.s32.totalorder %s675_s15, 3  ;;  %p755_p10 = por %p120_p7, %p64_p2 }
  0x13   : > { %p59_p13 = scmp.eq.s32.totalorder %s675_s15, 0  ;;  %p498_p1 = scmp.lt.s32.totalorder %s675_s15, 2 }
  0x14   : > { %s948_s24 = scalar_select %p755_p10, 1, 0 }
  0x15   : > { %p759_p11 = pnand %p443_p8, %p127_p9  ;;  %s769_s26 = sand.u32 1, %s671_s14  }
  0x16   : > { %p60_p2 = por %p59_p13, %p58_p0  ;;  %s446_s27 = sshll.u32 %s769_s26, 1 }
  0x17   : > { %s949_s25 = scalar_select %p759_p11, 1, 0 }
  0x18   : > { %p482_p4 = pneg %p759_p11  ;;  %s447_s28 = sshll.u32 %s675_s15, 5 }
  0x19   : > { %s781_s4 = scalar_lea.hbm %s939_s1, %s447_s28  ;;  %s677_s5 = smov [#allocation2]  }
  0x1a   : > { %p483_p7 = pnand %p482_p4, %p942_p3  ;;  %s153_s8 = scalar_lea.vmem [#allocation6], %s446_s27 }
  0x1b   : > { %s160_s9 = sshll.u32 %s153_s8, 4  ;;  %p786_p0 = pnand %p498_p1, %p60_p2  ;;  %s161_s9 = int_to_ptr.vmem [resolvable:$true] %s160_s9 }
  0x1c   : > { %485 = dma.hbm_to_smem (!%p483_p7), %s938_s0, 16, %s677_s5, [#allocation5]  }
  0x1d   : > { %s448_s11 = sshll.u32 %s769_s26, 3  ;;  %s150_s17 = scalar_lea.sflag [#allocation3], %s769_s26 }
  0x1e   : > { %s547_s19 = scalar_lea.hbm %s781_s4, 32  ;;  %p549_p9 = pneg %p786_p0 }
  0x1f   : > { %p548_p8 = scmp.ne.s32.totalorder %s781_s4, %s547_s19  ;;  %s552_s28 = scalar_lea.hbm %s939_s1, 64 }
  0x20   : > { %p553_p1 = scmp.lt.s32.totalorder %s781_s4, %s939_s1  ;;  %p554_p2 = scmp.lt.s32.totalorder %s552_s28, %s547_s19 }
  0x21   : > { %p550_p13 = pnand %p549_p9, %p548_p8 }
  0x22   : > { %p555_p7 = por %p554_p2, %p553_p1 }
  0x23   : > { %p551_p4 = pneg %p550_p13 }
  0x25   : > { %p556_p12 = pnand %p555_p7, %p551_p4 }
  0x27   : > { %559 = shalt.err (!%p556_p12)
}
  0x28   : > { %s560_s5 = scalar_lea.vmem %s161_s9, 32  ;;  %s678_s6 = smov [#allocation6]  }
  0x29   : > { %p561_p3 = scmp.ne.s32.totalorder %s161_s9, %s560_s5  ;;  %s565_s7 = sshll.u32 %s678_s6, 4  ;;  %s566_s7 = int_to_ptr.vmem [resolvable:$false] %s565_s7 }
  0x2a   : > { %s567_s8 = scalar_lea.vmem %s566_s7, 64  ;;  %p568_p13 = scmp.lt.s32.totalorder %s161_s9, %s566_s7 }
  0x2b   : > { %p563_p10 = pnand %p561_p3, %p549_p9  ;;  %p569_p6 = scmp.lt.s32.totalorder %s567_s8, %s560_s5 }
  0x2d   : > { %p564_p8 = pneg %p563_p10  ;;  %p570_p5 = por %p569_p6, %p568_p13 }
  0x2f   : > { %p571_p11 = pnand %p570_p5, %p564_p8 }
  0x31   : > { %574 = shalt.err (!%p571_p11)
}
  0x32   : > { %489 = dma.hbm_to_vmem [thread:$0]  (!%p786_p0), %s781_s4, 32, %s161_s9, %s150_s17  }
  0x33   : > { %s449_s19 = sshll.u32 %s675_s15, 7  ;;  %s171_s29 = scalar_lea.vmem [#allocation7], %s448_s11 }
  0x34   : > { %s816_s28 = scalar_lea.hbm %s940_s2, %s449_s19  ;;  %s178_s30 = sshll.u32 %s171_s29, 4  ;;  %s179_s30 = int_to_ptr.vmem [resolvable:$true] %s178_s30 }
  0x35   : > { %s168_s5 = scalar_lea.sflag [#allocation8], %s769_s26  ;;  %s575_s6 = scalar_lea.hbm %s816_s28, 128 }
  0x36   : > { %p576_p3 = scmp.ne.s32.totalorder %s816_s28, %s575_s6  ;;  %s580_s17 = scalar_lea.hbm %s940_s2, 256 }
  0x37   : > { %p581_p10 = scmp.lt.s32.totalorder %s816_s28, %s940_s2  ;;  %p582_p11 = scmp.lt.s32.totalorder %s580_s17, %s575_s6 }
  0x38   : > { %p578_p5 = pnand %p576_p3, %p549_p9 }
  0x39   : > { %p583_p12 = por %p582_p11, %p581_p10 }
  0x3a   : > { %p579_p6 = pneg %p578_p5 }
  0x3c   : > { %p584_p4 = pnand %p583_p12, %p579_p6 }
  0x3e   : > { %587 = shalt.err (!%p584_p4)
}
  0x3f   : > { %s588_s11 = scalar_lea.vmem %s179_s30, 128  ;;  %s679_s26 = smov [#allocation7]  }
  0x40   : > { %p589_p1 = scmp.ne.s32.totalorder %s179_s30, %s588_s11  ;;  %s593_s19 = sshll.u32 %s679_s26, 4  ;;  %s594_s19 = int_to_ptr.vmem [resolvable:$false] %s593_s19 }
  0x41   : > { %s595_s20 = scalar_lea.vmem %s594_s19, 256  ;;  %p596_p8 = scmp.lt.s32.totalorder %s179_s30, %s594_s19 }
  0x42   : > { %p591_p2 = pnand %p589_p1, %p549_p9  ;;  %p597_p13 = scmp.lt.s32.totalorder %s595_s20, %s588_s11 }
  0x44   : > { %p592_p7 = pneg %p591_p2  ;;  %p598_p3 = por %p597_p13, %p596_p8 }
  0x46   : > { %p599_p5 = pnand %p598_p3, %p592_p7 }
  0x48   : > { %602 = shalt.err (!%p599_p5)
}
  0x49   : > { %492 = dma.hbm_to_vmem [thread:$0]  (!%p786_p0), %s816_s28, 128, %s179_s30, %s168_s5  }
  0x4a   : > { %p951_p6 = scmp.ne.s32.totalorder %s949_s25, 0 }
  0x4b   : > { %p952_p10 = scmp.eq.s32.totalorder (!%p951_p6), %s722_s16, 0 }
  0x4c   : > { %187 = sbr.rel (%p951_p6) target bundleno = 167 (0xa7), region = 32 }
  0x51   : > { %646 = dma.done.wait (%p952_p10), [#allocation5], 16   ;;  %p953_p9 = pmov %p952_p10 }
  0x52   : > { %s846_s27 = sand.u32 1, %s667_s13   ;;  %p954_p0 = scmp.ne.s32.totalorder %s946_s22, 0 }
  0x53   : > { %648 = vsyncadd (%p953_p9), [#allocation5], 4294967280  ;;  %s452_s29 = sshll.u32 %s846_s27, 1  ;;  %s194_s6 = scalar_lea.sflag [#allocation3], %s846_s27 }
  0x54   : > { %s850_s10 = scalar_lea.vmem [#allocation6], %s452_s29 }
  0x55   : > { %650 = dma.done.wait (%p954_p0), %s194_s6, 32  }
  0x56   : > { %652 = vsyncadd (%p954_p0), %s194_s6, 4294967264  ;;  %s453_s25 = sshll.u32 %s846_s27, 3  ;;  %s203_s28 = scalar_lea.sflag [#allocation8], %s846_s27 }
  0x57   : > { %s206_s30 = scalar_lea.vmem [#allocation7], %s453_s25 }
  0x58   : > { %654 = dma.done.wait (%p954_p0), %s203_s28, 128  }
  0x59   : > { %656 = vsyncadd (%p954_p0), %s203_s28, 4294967168 }
  0x5a   : > { %211 = sfence }
  0x5b   : > { %v245_v0 = vld [vmem:[%s206_s30] sm:$0xff]  ;;  %v273_v20 = vlaneseq  ;;  %s864_s22 = sld [smem:[#allocation2]]  ;;  %v266_v22 = vld [vmem:[%s850_s10] sm:$0x1]  ;;  %v267_v26 = vld [vmem:[%s850_s10 + $0x1] sm:$0x1] }
  0x5c   : > { %v246_v1 = vrot.slane %v245_v0, 4  ;;  %v253_v2 = vmul.f32 %v245_v0, %v245_v0  ;;  %s866_s5 = sld [smem:[#allocation2 + $0x1]]  ;;  %s234_s30 = scalar_lea.vmem [#allocation9], %s453_s25 }
  0x5d   : > { %v274_v21 = vshrl.u32 %v273_v20, 7  ;;  %s463_s4 = sld [smem:[#allocation2 + $0xa]]  ;;  %p955_p12 = scmp.ne.s32.totalorder %s947_s23, 0 }
  0x5e   : > { %v247_v3 = vadd.f32 %v246_v1, %v245_v0  ;;  %v254_v4 = vrot.slane %v253_v2, 4  ;;  %s868_s9 = sld [smem:[#allocation2 + $0x8]]  ;;  %s680_s25 = smov [#allocation9]  }
  0x5f   : > { %s462_s17 = sld [smem:[#allocation2 + $0x9]]  ;;  %v275_v23 = vsub.s32 0, %v274_v21 }
  0x60   : > { %v248_v5 = vrot.slane %v247_v3, 2  ;;  %v255_v6 = vadd.f32 %v254_v4, %v253_v2  ;;  %s871_s7 = sld [smem:[#allocation2 + $0x2]] }
  0x61   : > { %s873_s8 = sld [smem:[#allocation2 + $0x7]]  ;;  %v286_v33 = vstv %s864_s22  ;;  %s337_s22 = sshll.u32 %s234_s30, 4  ;;  %s898_s22 = int_to_ptr.vmem [resolvable:$true] %s337_s22 }
  0x62   : > { %v249_v7 = vadd.f32 %v248_v5, %v247_v3  ;;  %v256_v8 = vrot.slane %v255_v6, 2  ;;  %s875_s11 = sld [smem:[#allocation2 + $0x6]]  ;;  %v291_v35 = vstv %s866_s5  ;;  %s469_s5 = sshll.u32 %s722_s16, 7 }
  0x63   : > { %s878_s26 = sld [smem:[#allocation2 + $0x3]]  ;;  %s607_s16 = sshll.u32 %s680_s25, 4  ;;  %s608_s16 = int_to_ptr.vmem [resolvable:$false] %s607_s16 }
  0x64   : > { %v250_v9 = vrot.slane %v249_v7, 1  ;;  %v257_v10 = vadd.f32 %v256_v8, %v255_v6  ;;  %s880_s19 = sld [smem:[#allocation2 + $0x4]]  ;;  %p610_p2 = scmp.lt.s32.totalorder %s898_s22, %s608_s16 }
  0x65   : > { %s285_s20 = ssub.f32 0.0, %s463_s4 }
  0x66   : > { %v251_v11 = vadd.f32 %v250_v9, %v249_v7  ;;  %v258_v12 = vrot.slane %v257_v10, 1  ;;  %s298_s29 = ssub.f32 0.0, %s868_s9  ;;  %v299_v36 = vstv %s871_s7  ;;  %s324_s7 = scalar_lea.sflag [#allocation4], %s846_s27 }
  0x67   : > { %s290_s6 = ssub.f32 0.0, %s462_s17  ;;  %v287_v34 = vstv %s285_s20  ;;  %s335_s17 = scalar_lea.hbm %s941_s3, %s469_s5 }
  0x68   : > { %v259_v13 = vadd.f32 %v258_v12, %v257_v10  ;;  %v261_v14 = vmul.f32 0.125, %v251_v11  ;;  %s306_s10 = ssub.f32 0.0, %s873_s8  ;;  %v300_v39 = vstv %s298_s29  ;;  %s603_s8 = scalar_lea.vmem %s898_s22, 128 }
  0x69   : > { %s314_s28 = ssub.f32 0.0, %s875_s11  ;;  %v292_v38 = vstv %s290_s6  ;;  %v307_v41 = vstv %s878_s26  ;;  %p604_p11 = scmp.ne.s32.totalorder %s898_s22, %s603_s8 }
  0x6a   : > { %v262_v15 = vmul.f32 0.125, %v259_v13  ;;  %v263_v16 = vmul.f32 %v261_v14, %v261_v14  ;;  %v315_v42 = vstv %s880_s19  ;;  %v308_v45 = vstv %s306_s10  ;;  %s609_s11 = scalar_lea.vmem %s608_s16, 256 }
  0x6b   : > { %v316_v49 = vstv %s314_s28  ;;  %p605_p4 = pnand %p604_p11, %p955_p12  ;;  %p611_p7 = scmp.lt.s32.totalorder %s609_s11, %s603_s8 }
  0x6c   : > { %v264_v17 = vsub.f32 %v262_v15, %v263_v16 }
  0x6d   : > { %p606_p1 = pneg %p605_p4  ;;  %p612_p8 = por %p611_p7, %p610_p2 }
  0x6e   : > { %v265_v18 = vmax.f32 %v264_v17, 0.0 }
  0x6f   : > { %p613_p13 = pnand %p612_p8, %p606_p1 }
  0x70   : > { %v268_v19 = vadd.f32 1e-05, %v265_v18 }
  0x72   : > { %534 = vrsqrt.f32 %v268_v19 }
  0x7f   : > { %v535_v24 = vpop.eup %534 }
  0x80   : > { %v270_v25 = vmul.f32 %v535_v24, %v266_v22 }
  0x82   : > { %v271_v27 = vmul.f32 %v270_v25, %v261_v14  ;;  %v276_v28 = vrot.slane %v270_v25, %v275_v23 }
  0x84   : > { %v272_v29 = vsub.f32 %v267_v26, %v271_v27  ;;  %v277_v30 = vmul.f32 %v276_v28, %v245_v0 }
  0x86   : > { %v281_v31 = vrot.slane %v272_v29, %v275_v23 }
  0x88   : > { %v282_v32 = vadd.f32 %v281_v31, %v277_v30 }
  0x8a   : > { %vm283_vm0 = vcmp.ge.f32.partialorder %v282_v32, 0.0  ;;  %v284_v37 = vand.u32 2147483647, %v282_v32 }
  0x8b   : > { %v288_v40 = vsel %vm283_vm0, %v286_v33, %v287_v34  ;;  %v293_v47 = vsel %vm283_vm0, %v291_v35, %v292_v38  ;;  %v301_v48 = vsel %vm283_vm0, %v299_v36, %v300_v39  ;;  %v309_v55 = vsel %vm283_vm0, %v307_v41, %v308_v45 }
  0x8c   : > { %v464_v43 = vadd.f32 -0.825, %v284_v37  ;;  %v465_v44 = vadd.f32 -1.65, %v284_v37  ;;  %v466_v46 = vadd.f32 -2.475, %v284_v37  ;;  %v289_v51 = vmul.f32 %v288_v40, %v284_v37 }
  0x8d   : > { %v467_v50 = vadd.f32 -3.3, %v284_v37  ;;  %v317_v59 = vsel %vm283_vm0, %v315_v42, %v316_v49 }
  0x8e   : > { %v295_v52 = vmax.f32 %v464_v43, 0.0  ;;  %v303_v53 = vmax.f32 %v465_v44, 0.0  ;;  %v311_v54 = vmax.f32 %v466_v46, 0.0 }
  0x8f   : > { %v319_v58 = vmax.f32 %v467_v50, 0.0 }
  0x90   : > { %v296_v56 = vmul.f32 %v295_v52, %v293_v47  ;;  %v304_v57 = vmul.f32 %v303_v53, %v301_v48  ;;  %v312_v61 = vmul.f32 %v311_v54, %v309_v55 }
  0x91   : > { %v320_v63 = vmul.f32 %v319_v58, %v317_v59 }
  0x92   : > { %v297_v60 = vadd.f32 %v296_v56, %v289_v51 }
  0x94   : > { %v305_v62 = vadd.f32 %v304_v57, %v297_v60 }
  0x96   : > { %v313_v0 = vadd.f32 %v312_v61, %v305_v62 }
  0x98   : > { %v321_v1 = vadd.f32 %v320_v63, %v313_v0 }
  0x9a   : > { %322 = vst [vmem:[%s234_s30] sm:$0xff] %v321_v1 }
  0x9b   : > { %616 = shalt.err (!%p613_p13)
}
  0x9c   : > { %s617_s26 = scalar_lea.hbm %s335_s17, 128  ;;  %s621_s20 = scalar_lea.hbm %s941_s3, 256 }
  0x9d   : > { %p618_p3 = scmp.ne.s32.totalorder %s335_s17, %s617_s26  ;;  %p622_p10 = scmp.lt.s32.totalorder %s335_s17, %s941_s3 }
  0x9e   : > { %p623_p9 = scmp.lt.s32.totalorder %s621_s20, %s617_s26 }
  0x9f   : > { %p619_p5 = pnand %p618_p3, %p955_p12 }
  0xa0   : > { %p624_p0 = por %p623_p9, %p622_p10 }
  0xa1   : > { %p620_p6 = pneg %p619_p5 }
  0xa3   : > { %p625_p11 = pnand %p624_p0, %p620_p6 }
  0xa5   : > { %628 = shalt.err (!%p625_p11)
}
  0xa6   : > { %480 = dma.vmem_to_hbm [thread:$0]  (%p955_p12), %s898_s22, 128, %s335_s17, %s324_s7  }
  0xa7 PF: > { %s349_s10 = sand.u32 1, %s663_s12   ;;  %p956_p4 = scmp.ne.s32.totalorder %s948_s24, 0 }
  0xa8   : > { %p957_p1 = scmp.ge.s32.totalorder %s675_s15, 2  ;;  %s350_s28 = scalar_lea.sflag [#allocation4], %s349_s10 }
  0xaa   : > { %p494_p2 = pnand %p957_p1, %p956_p4 }
  0xac   : > { %p495_p7 = pneg %p494_p2 }
  0xae   : > { %658 = dma.done.wait (%p495_p7), %s350_s28, 128  }
  0xaf   : > { %660 = vsyncadd (%p495_p7), %s350_s28, 4294967168  ;;  %p20_p8 = scmp.ge.s32.totalorder %s726_s18, 4   ;;  %s958_s12 = smov %s667_s13 }
  0xb0   : > { %s959_s13 = smov %s671_s14  ;;  %s960_s14 = smov %s738_s21 }
  0xb1   : > { %s961_s15 = smov %s726_s18  ;;  %22 = sbr.rel (!%p20_p8) target bundleno = 8 (0x8), region = 95 }
  0xb6   :  { %355 = vsyncpa [#allocation3], 1 }
  0xb7   :  { %357 = vsyncpa [#allocation3 + $0x1], 1 }
  0xb8   :  { %358 = vsyncpa [#allocation8], 1 }
  0xb9   :  { %360 = vsyncpa [#allocation8 + $0x1], 1 }
  0xba   :  { %361 = vsyncpa [#allocation4], 1 }
  0xbb   :  { %363 = vsyncpa [#allocation4 + $0x1], 1 }
  0xbc   :  { %364 = vsyncpa [#allocation5], 1 }
  0xbd   :  { %366 = vsyncpa [#allocation5 + $0x1], 1 }

</bundles_post_ra>
